<compile_context>
chip_gen: v7x
topology: tpu7x:2x2x1
jax: 0.10.0
libtpu: 0.0.40
codegen_flags: <defaults>
</compile_context>

<pallas_src>
import functools

import jax
import jax.numpy as jnp
from jax import lax
from jax.experimental import pallas as pl
from jax.experimental.pallas import tpu as pltpu


def _round_up(x, m):
    return ((x + m - 1) // m) * m


def _semantic_cosine_kernel(q_ref, t_ref, w_ref, b_ref,
                            sim_ref, q_emb_ref, t_emb_ref, *, mxu_dtype):
    """One batch tile.

    q_ref, t_ref : [TB, H]  CLS rows of query / title last_hidden_state
    w_ref        : [H, E]   linear weight (transposed vs torch), f32 or bf16
    b_ref        : [1, E]   linear bias (f32)
    sim_ref      : [1, TB]  cosine sim, lane-dense (batch on the lane axis)
    q_emb_ref    : [TB, E]  normalized query embeddings
    t_emb_ref    : [TB, E]  normalized title embeddings
    """
    w = w_ref[...].astype(mxu_dtype)          # no-op when already mxu_dtype
    b = b_ref[...].astype(jnp.float32)

    def embed(x_ref, out_ref):
        x = x_ref[...].astype(mxu_dtype)
        # linear projection (MXU, f32 accumulate)
        proj = jnp.dot(x, w, preferred_element_type=jnp.float32) + b   # [TB, E]
        # dropout: identity in eval / no_grad embedding extraction.
        # TODO(synk): training-mode dropout (p=0.1) would need pltpu.prng_* bits.
        # L2 normalize (F.normalize p=2, eps=1e-12) via rsqrt (EUP slot);
        # max(sumsq, 1e-24) == (max(norm, 1e-12))^2, so semantics match.
        sumsq = jnp.sum(proj * proj, axis=-1, keepdims=True)           # [TB, 1]
        inv = lax.rsqrt(jnp.maximum(sumsq, 1e-24))
        emb = proj * inv                                               # [TB, E] f32
        out_ref[...] = emb.astype(out_ref.dtype)
        return emb

    q_emb = embed(q_ref, q_emb_ref)
    t_emb = embed(t_ref, t_emb_ref)

    # cosine similarity, stored lane-dense as a single row
    sim = jnp.sum(q_emb * t_emb, axis=-1)                              # [TB]
    sim_ref[...] = sim[None, :]


def _const_block_spec(shape):
    """BlockSpec for a grid-resident (constant-index) input, single-buffered."""
    index_map = lambda i: (0,) * len(shape)
    try:
        return pl.BlockSpec(shape, index_map, pipeline_mode=pl.Buffered(1))
    except TypeError:                       # jax without pipeline_mode kwarg
        return pl.BlockSpec(shape, index_map)


@functools.partial(jax.jit,
                   static_argnames=("batch_tile", "use_bf16_mxu", "emb_dtype"))
def semantic_cosine_sim(query_last_hidden, title_last_hidden, weight, bias,
                        *, batch_tile=512, use_bf16_mxu=False,
                        emb_dtype=jnp.float32):
    """SemanticIndexBase.cosine_sim (minus the PTM backbone).

    query_last_hidden, title_last_hidden : [B, S, H]
    weight : [H, E]   (torch nn.Linear weight is [E, H]; pass weight.T)
    bias   : [E]
    Returns (cosine_sim [B] f32, q_emb [B, E], t_emb [B, E]).

    use_bf16_mxu: bf16 MXU operands with f32 accumulate (worth it on v5e too,
    where the f32 MXU path is multi-pass); embeddings carry the bf16
    quantization of the projection inputs (~1e-2 relative).
    """
    B, S, H = query_last_hidden.shape
    E = weight.shape[1]

    # --- 'cls' pooling without an extra HBM pass ----------------------------
    # A contiguous reshape to [B, S*H] is layout-free; the (tb, H) input block
    # at column-block 0 then DMAs exactly the CLS row of every example.
    if H % 128 == 0 or S == 1:
        q2d = query_last_hidden.reshape(B, S * H)
        t2d = title_last_hidden.reshape(B, S * H)
    else:
        # H would violate the 128-lane block rule -> slice CLS in the wrapper.
        q2d = query_last_hidden[:, 0, :]
        t2d = title_last_hidden[:, 0, :]

    # --- batch tiling --------------------------------------------------------
    if B <= batch_tile:
        if B >= 256:
            # >= 2 grid steps so the "parallel" axis splits across v7x's 2 TCs.
            tb = _round_up(pl.cdiv(B, 2), 128)
        else:
            tb = B                               # single exact tile (tb == dim)
    else:
        tb = max(128, batch_tile - batch_tile % 128)
    num_tiles = pl.cdiv(B, tb)                   # ragged last block is fine

    mxu_dtype = jnp.bfloat16 if use_bf16_mxu else jnp.float32
    w = weight.astype(mxu_dtype)                 # bf16-in-HBM halves W traffic
    bias2d = bias.reshape(1, E).astype(jnp.float32)

    kernel = functools.partial(_semantic_cosine_kernel, mxu_dtype=mxu_dtype)

    in_isz = jnp.dtype(q2d.dtype).itemsize
    w_isz = jnp.dtype(w.dtype).itemsize
    e_isz = jnp.dtype(emb_dtype).itemsize

    # VMEM: pipeline blocks (inputs/outputs double-buffered, W/bias single)
    # plus rough in-kernel f32 temporaries; clamp to [32, 48] MiB (v7x-safe).
    block_bytes = (2 * 2 * tb * H * in_isz            # q, t CLS tiles
                   + H * E * w_isz + E * 4            # weight + bias
                   + 2 * 2 * tb * E * e_isz           # q_emb, t_emb tiles
                   + 2 * tb * 4)                      # sim tile
    temp_bytes = 2 * tb * (2 * H + 4 * E) * 4
    vmem_limit = int(min(48 * 1024 * 1024,
                         max(32 * 1024 * 1024,
                             1.5 * (block_bytes + temp_bytes))))

    cost = pl.CostEstimate(
        flops=2 * 2 * num_tiles * tb * H * E,
        transcendentals=2 * num_tiles * tb,
        bytes_accessed=(2 * num_tiles * tb * H * in_isz     # CLS rows
                        + H * E * w_isz + E * 4             # W + bias (once)
                        + 2 * B * E * e_isz + B * 4),       # emb + sim out
    )

    sim2d, q_emb, t_emb = pl.pallas_call(
        kernel,
        out_shape=(
            jax.ShapeDtypeStruct((1, B), jnp.float32),      # sim (lane-dense)
            jax.ShapeDtypeStruct((B, E), emb_dtype),        # q_emb
            jax.ShapeDtypeStruct((B, E), emb_dtype),        # t_emb
        ),
        grid_spec=pltpu.PrefetchScalarGridSpec(
            num_scalar_prefetch=0,
            grid=(num_tiles,),
            in_specs=[
                pl.BlockSpec((tb, H), lambda i: (i, 0)),    # q CLS rows
                pl.BlockSpec((tb, H), lambda i: (i, 0)),    # t CLS rows
                _const_block_spec((H, E)),                  # weight (resident)
                _const_block_spec((1, E)),                  # bias (resident)
            ],
            out_specs=(
                pl.BlockSpec((1, tb), lambda i: (0, i)),
                pl.BlockSpec((tb, E), lambda i: (i, 0)),
                pl.BlockSpec((tb, E), lambda i: (i, 0)),
            ),
        ),
        compiler_params=pltpu.CompilerParams(
            dimension_semantics=("parallel",),
            vmem_limit_bytes=vmem_limit,
        ),
        cost_estimate=cost,
    )(q2d, t2d, w, bias2d)

    return sim2d[0], q_emb, t_emb


def _reference(query_last_hidden, title_last_hidden, weight, bias):
    """Plain-JAX f32 reference of the same math."""
    def pooled(h):
        cls = h[:, 0, :].astype(jnp.float32)
        e = cls @ weight.astype(jnp.float32) + bias.astype(jnp.float32)
        n = jnp.sqrt(jnp.sum(e * e, axis=-1, keepdims=True))
        return e / jnp.maximum(n, 1e-12)
    q = pooled(query_last_hidden)
    t = pooled(title_last_hidden)
    return jnp.sum(q * t, axis=-1), q, t


if __name__ == "__main__":
    key = jax.random.PRNGKey(0)
    k1, k2, k3, k4, k5, k6, k7, k8 = jax.random.split(key, 8)

    # ---- small-shape test (B=2, S=8, H=256, E=128): fused CLS-read path ----
    B, S, H, E = 2, 8, 256, 128
    q_lh = jax.random.normal(k1, (B, S, H), dtype=jnp.float32)
    t_lh = jax.random.normal(k2, (B, S, H), dtype=jnp.float32)
    weight = jax.random.normal(k3, (H, E), dtype=jnp.float32) / jnp.sqrt(H)
    bias = jax.random.normal(k4, (E,), dtype=jnp.float32) * 0.01

    sim, q_emb, t_emb = semantic_cosine_sim(q_lh, t_lh, weight, bias)
    jax.block_until_ready((sim, q_emb, t_emb))
    ref_sim, ref_q, ref_t = _reference(q_lh, t_lh, weight, bias)
    assert sim.shape == (B,)
    assert jnp.allclose(sim, ref_sim, atol=1e-5), (sim, ref_sim)
    assert jnp.allclose(q_emb, ref_q, atol=1e-5)
    assert jnp.allclose(t_emb, ref_t, atol=1e-5)
    assert jnp.allclose(jnp.sum(q_emb * q_emb, axis=-1), 1.0, atol=1e-5)

    # ---- multi-tile ragged grid (B=160, tile=128 -> 2 steps, masked tail) --
    B2 = 160
    q2 = jax.random.normal(k5, (B2, S, H), dtype=jnp.float32)
    t2 = jax.random.normal(k6, (B2, S, H), dtype=jnp.float32)
    sim2, q_emb2, t_emb2 = semantic_cosine_sim(q2, t2, weight, bias,
                                               batch_tile=128)
    jax.block_until_ready((sim2, q_emb2, t_emb2))
    ref2, refq2, _ = _reference(q2, t2, weight, bias)
    assert jnp.allclose(sim2, ref2, atol=1e-5)
    assert jnp.allclose(q_emb2, refq2, atol=1e-5)

    # ---- H not a multiple of 128: wrapper CLS-slice fallback path ----------
    H3, E3 = 96, 128
    w3 = jax.random.normal(k7, (H3, E3), dtype=jnp.float32) / jnp.sqrt(H3)
    q3 = jax.random.normal(k8, (B, S, H3), dtype=jnp.float32)
    t3 = jax.random.normal(k1, (B, S, H3), dtype=jnp.float32)
    b3 = jnp.zeros((E3,), dtype=jnp.float32)
    sim3, _, _ = semantic_cosine_sim(q3, t3, w3, b3)
    jax.block_until_ready(sim3)
    ref3, _, _ = _reference(q3, t3, w3, b3)
    assert jnp.allclose(sim3, ref3, atol=1e-5)

    # ---- bf16 MXU path (bf16 W in HBM), looser tolerance -------------------
    sim_bf16, _, _ = semantic_cosine_sim(q_lh, t_lh, weight, bias,
                                         use_bf16_mxu=True)
    jax.block_until_ready(sim_bf16)
    assert jnp.allclose(sim_bf16, ref_sim, atol=2e-2, rtol=2e-2)

    print("KERNEL_OK")
</pallas_src>

<mosaic_0001>
module attributes {stable_mosaic.version = 11 : i64} {
  func.func @_semantic_cosine_kernel(%arg0: i32, %arg1: memref<2x256xf32, #tpu.memory_space<vmem>>, %arg2: memref<2x256xf32, #tpu.memory_space<vmem>>, %arg3: memref<256x128xf32, #tpu.memory_space<vmem>>, %arg4: memref<1x128xf32, #tpu.memory_space<vmem>>, %arg5: memref<1x2xf32, #tpu.memory_space<vmem>>, %arg6: memref<2x128xf32, #tpu.memory_space<vmem>>, %arg7: memref<2x128xf32, #tpu.memory_space<vmem>>) attributes {dimension_semantics = [#tpu.dimension_semantics<parallel>], iteration_bounds = array<i64: 1>, scalar_prefetch = 0 : i64, scratch_operands = 0 : i64, tpu.core_type = #tpu.core_type<tc>, window_params = [{transform_indices = @transform_0, window_bounds = array<i64: 2, 256>}, {transform_indices = @transform_1, window_bounds = array<i64: 2, 256>}, {pipeline_mode = #tpu.pipeline_mode<synchronous>, transform_indices = @transform_2, window_bounds = array<i64: 256, 128>}, {pipeline_mode = #tpu.pipeline_mode<synchronous>, transform_indices = @transform_3, window_bounds = array<i64: 1, 128>}, {transform_indices = @transform_4, window_bounds = array<i64: 1, 2>}, {transform_indices = @transform_5, window_bounds = array<i64: 2, 128>}, {transform_indices = @transform_6, window_bounds = array<i64: 2, 128>}]} {
    %c0 = arith.constant 0 : index
    %c0_0 = arith.constant 0 : index
    %0 = vector.load %arg3[%c0, %c0_0] : memref<256x128xf32, #tpu.memory_space<vmem>>, vector<256x128xf32>
    %c0_1 = arith.constant 0 : index
    %c0_2 = arith.constant 0 : index
    %1 = vector.load %arg4[%c0_1, %c0_2] : memref<1x128xf32, #tpu.memory_space<vmem>>, vector<1x128xf32>
    %c0_3 = arith.constant 0 : index
    %c0_4 = arith.constant 0 : index
    %2 = vector.load %arg1[%c0_3, %c0_4] : memref<2x256xf32, #tpu.memory_space<vmem>>, vector<2x256xf32>
    %cst = arith.constant dense<0.000000e+00> : vector<2x128xf32>
    %3 = tpu.matmul %2, %0, %cst {dimension_numbers = #tpu.dot_dimension_numbers<[1], [0], [0], [1], [0, 0, 1, 1], [], []>} : vector<2x256xf32>, vector<256x128xf32>, vector<2x128xf32> -> vector<2x128xf32>
    %4 = vector.broadcast %1 : vector<1x128xf32> to vector<2x128xf32>
    %5 = arith.addf %3, %4 : vector<2x128xf32>
    %6 = arith.mulf %5, %5 : vector<2x128xf32>
    %cst_5 = arith.constant dense<0.000000e+00> : vector<2xf32>
    %7 = vector.multi_reduction <add>, %6, %cst_5 [1] : vector<2x128xf32> to vector<2xf32>
    %8 = vector.shape_cast %7 : vector<2xf32> to vector<2x1xf32>
    %cst_6 = arith.constant 1.000000e-24 : f32
    %9 = vector.broadcast %cst_6 : f32 to vector<2x1xf32>
    %10 = arith.maximumf %8, %9 : vector<2x1xf32>
    %11 = math.rsqrt %10 : vector<2x1xf32>
    %12 = vector.broadcast %11 : vector<2x1xf32> to vector<2x128xf32>
    %13 = arith.mulf %5, %12 : vector<2x128xf32>
    %c0_7 = arith.constant 0 : index
    %c0_8 = arith.constant 0 : index
    %14 = vector.load %arg6[%c0_7, %c0_8] : memref<2x128xf32, #tpu.memory_space<vmem>>, vector<2x128xf32>
    tpu.vector_store %arg6[%c0_7, %c0_8], %13 {strides = array<i32>} : memref<2x128xf32, #tpu.memory_space<vmem>>, vector<2x128xf32>,
    %c0_9 = arith.constant 0 : index
    %c0_10 = arith.constant 0 : index
    %15 = vector.load %arg2[%c0_9, %c0_10] : memref<2x256xf32, #tpu.memory_space<vmem>>, vector<2x256xf32>
    %cst_11 = arith.constant dense<0.000000e+00> : vector<2x128xf32>
    %16 = tpu.matmul %15, %0, %cst_11 {dimension_numbers = #tpu.dot_dimension_numbers<[1], [0], [0], [1], [0, 0, 1, 1], [], []>} : vector<2x256xf32>, vector<256x128xf32>, vector<2x128xf32> -> vector<2x128xf32>
    %17 = vector.broadcast %1 : vector<1x128xf32> to vector<2x128xf32>
    %18 = arith.addf %16, %17 : vector<2x128xf32>
    %19 = arith.mulf %18, %18 : vector<2x128xf32>
    %cst_12 = arith.constant dense<0.000000e+00> : vector<2xf32>
    %20 = vector.multi_reduction <add>, %19, %cst_12 [1] : vector<2x128xf32> to vector<2xf32>
    %21 = vector.shape_cast %20 : vector<2xf32> to vector<2x1xf32>
    %cst_13 = arith.constant 1.000000e-24 : f32
    %22 = vector.broadcast %cst_13 : f32 to vector<2x1xf32>
    %23 = arith.maximumf %21, %22 : vector<2x1xf32>
    %24 = math.rsqrt %23 : vector<2x1xf32>
    %25 = vector.broadcast %24 : vector<2x1xf32> to vector<2x128xf32>
    %26 = arith.mulf %18, %25 : vector<2x128xf32>
    %c0_14 = arith.constant 0 : index
    %c0_15 = arith.constant 0 : index
    %27 = vector.load %arg7[%c0_14, %c0_15] : memref<2x128xf32, #tpu.memory_space<vmem>>, vector<2x128xf32>
    tpu.vector_store %arg7[%c0_14, %c0_15], %26 {strides = array<i32>} : memref<2x128xf32, #tpu.memory_space<vmem>>, vector<2x128xf32>,
    %28 = arith.mulf %13, %26 : vector<2x128xf32>
    %cst_16 = arith.constant dense<0.000000e+00> : vector<2xf32>
    %29 = vector.multi_reduction <add>, %28, %cst_16 [1] : vector<2x128xf32> to vector<2xf32>
    %30 = vector.shape_cast %29 : vector<2xf32> to vector<1x2xf32>
    %c0_17 = arith.constant 0 : index
    %c0_18 = arith.constant 0 : index
    %31 = vector.load %arg5[%c0_17, %c0_18] : memref<1x2xf32, #tpu.memory_space<vmem>>, vector<1x2xf32>
    tpu.vector_store %arg5[%c0_17, %c0_18], %30 {strides = array<i32>} : memref<1x2xf32, #tpu.memory_space<vmem>>, vector<1x2xf32>,
    return
  }
  func.func @transform_0(%arg0: i32) -> (i32, i32) {
    %c0_i32 = arith.constant 0 : i32
    %c0_i32_0 = arith.constant 0 : i32
    return %arg0, %c0_i32 : i32, i32
  }
  func.func @transform_1(%arg0: i32) -> (i32, i32) {
    %c0_i32 = arith.constant 0 : i32
    %c0_i32_0 = arith.constant 0 : i32
    return %arg0, %c0_i32 : i32, i32
  }
  func.func @transform_2(%arg0: i32) -> (i32, i32) {
    %c0_i32 = arith.constant 0 : i32
    %c0_i32_0 = arith.constant 0 : i32
    %c0_i32_1 = arith.constant 0 : i32
    return %c0_i32, %c0_i32_0 : i32, i32
  }
  func.func @transform_3(%arg0: i32) -> (i32, i32) {
    %c0_i32 = arith.constant 0 : i32
    %c0_i32_0 = arith.constant 0 : i32
    %c0_i32_1 = arith.constant 0 : i32
    return %c0_i32, %c0_i32_0 : i32, i32
  }
  func.func @transform_4(%arg0: i32) -> (i32, i32) {
    %c0_i32 = arith.constant 0 : i32
    %c0_i32_0 = arith.constant 0 : i32
    return %c0_i32, %arg0 : i32, i32
  }
  func.func @transform_5(%arg0: i32) -> (i32, i32) {
    %c0_i32 = arith.constant 0 : i32
    %c0_i32_0 = arith.constant 0 : i32
    return %arg0, %c0_i32 : i32, i32
  }
  func.func @transform_6(%arg0: i32) -> (i32, i32) {
    %c0_i32 = arith.constant 0 : i32
    %c0_i32_0 = arith.constant 0 : i32
    return %arg0, %c0_i32 : i32, i32
  }
}

</mosaic_0001>

<bundles_post_ra>
// kernel: semantic_cosine_sim.1
= control target key start
LH: loop header
LB: loop body
LE: loop exit
PB: predicated region body
PF: predicated region fallthrough
CT: control target
= control target key end

     0   :  { %12 = vsyncpa [#allocation3], 0  ;;  %s654_s0 = inlined_call_operand.vmem [shape: f32[2,2048], index: 0, kind: input, shape index: {}]   ;;  %s655_s1 = inlined_call_operand.vmem [shape: f32[2,2048], index: 1, kind: input, shape index: {}]   ;;  %s656_s2 = inlined_call_operand.hbm [shape: f32[256,128], index: 2, kind: input, shape index: {}]   ;;  %s657_s3 = inlined_call_operand.vmem [shape: f32[1,128], index: 3, kind: input, shape index: {}]   ;;  %s658_s4 = inlined_call_operand.hbm [shape: f32[1,2], index: 4, kind: output, shape index: {0}]   ;;  %s659_s5 = inlined_call_operand.hbm [shape: f32[2,128], index: 5, kind: output, shape index: {1}]   ;;  %s660_s6 = inlined_call_operand.hbm [shape: f32[2,128], index: 6, kind: output, shape index: {2}]  }
   0x1   :  { %13 = vsyncpa [#allocation4], 0 }
   0x2   :  { %14 = vsyncpa [#allocation7], 0  ;;  %s553_s21 = smov [#allocation2]   ;;  %s459_s25 = scalar_lea.hbm %s656_s2, 4096 }
   0x3   :  { %s24_s22 = sshll.u32 %s553_s21, 4  ;;  %p460_p0 = scmp.ne.s32.totalorder %s656_s2, %s459_s25  ;;  %s25_s22 = int_to_ptr.vmem [resolvable:$true] %s24_s22 }
   0x4   :  { %p463_p1 = scmp.lt.u32.totalorder %s459_s25, %s656_s2 }
   0x6   :  { %p465_p2 = pnand %p463_p1, %p460_p0 }
   0x8   :  { %468 = shalt.err (!%p465_p2)
}
   0x9   :  { %s469_s30 = scalar_lea.vmem %s25_s22, 4096  ;;  %p474_p4 = scmp.lt.s32.totalorder %s25_s22, %s25_s22 }
   0xa   :  { %p470_p3 = scmp.ne.s32.totalorder %s25_s22, %s469_s30  ;;  %p475_p5 = scmp.lt.s32.totalorder %s469_s30, %s469_s30 }
   0xc   :  { %p476_p6 = por %p475_p5, %p474_p4 }
   0xe   :  { %p477_p7 = pnand %p476_p6, %p470_p3 }
  0x10   :  { %480 = shalt.err (!%p477_p7)
}
  0x11   :  { %s554_s7 = smov 128   ;;  %s555_s8 = smov 8  }
  0x12   :  { %30 = dma.hbm_to_vmem [thread:$0]  %s656_s2, 4096, %s25_s22, [#allocation3], %s554_s7, %s554_s7, %s555_s8  }
  0x13   :  { %547 = dma.done.wait [#allocation3], 4096  }
  0x14   :  { %548 = vsyncadd [#allocation3], 4294963200  ;;  %v52_v0 = vld [vmem:[#allocation2 + $0x80] sm:$0xff]  ;;  %v53_v1 = vld [vmem:[#allocation2 + $0x88] sm:$0xff]  ;;  %vm158_vm0 = vcmask 1041408  }
  0x15   :  { %v36_v2 = vld [vmem:[#allocation2] sm:$0xff]  ;;  %v385_v3 = vpack.c.bf16 %v53_v1, %v52_v0  ;;  %v37_v4 = vld [vmem:[#allocation2 + $0x8] sm:$0xff]  ;;  %v54_v5 = vld [vmem:[#allocation2 + $0x90] sm:$0xff] }
  0x16   :  { %v55_v6 = vld [vmem:[#allocation2 + $0x98] sm:$0xff]  ;;  %v387_v7 = vpack.c.bf16 %v37_v4, %v36_v2  ;;  %v38_v9 = vld [vmem:[#allocation2 + $0x10] sm:$0xff]  ;;  %v56_v11 = vld [vmem:[#allocation2 + $0xa0] sm:$0xff] }
  0x17   :  { %v389_v8 = vpack.c.bf16 %v55_v6, %v54_v5  ;;  %v39_v10 = vld [vmem:[#allocation2 + $0x18] sm:$0xff]  ;;  %386 = vmatprep.subr.bf16.mxu0 %v385_v3  ;;  %418 = vmatprep.subr.bf16.mxu1 %v385_v3  ;;  %v57_v12 = vld [vmem:[#allocation2 + $0xa8] sm:$0xff]  ;;  %v40_v15 = vld [vmem:[#allocation2 + $0x20] sm:$0xff] }
  0x18   :  { %388 = vmatpush3.bf16.msra.mxu0 %v387_v7  ;;  %420 = vmatpush3.bf16.msra.mxu1 %v387_v7  ;;  %v391_v13 = vpack.c.bf16 %v39_v10, %v38_v9  ;;  %v393_v14 = vpack.c.bf16 %v57_v12, %v56_v11  ;;  %v41_v16 = vld [vmem:[#allocation2 + $0x28] sm:$0xff]  ;;  %v58_v17 = vld [vmem:[#allocation2 + $0xb0] sm:$0xff]  ;;  %v59_v18 = vld [vmem:[#allocation2 + $0xb8] sm:$0xff] }
  0x19   :  { %390 = vmatprep.subr.bf16.mxu0 %v389_v8  ;;  %422 = vmatprep.subr.bf16.mxu1 %v389_v8  ;;  %v395_v19 = vpack.c.bf16 %v41_v16, %v40_v15  ;;  %v397_v20 = vpack.c.bf16 %v59_v18, %v58_v17  ;;  %v42_v21 = vld [vmem:[#allocation2 + $0x30] sm:$0xff]  ;;  %v43_v22 = vld [vmem:[#allocation2 + $0x38] sm:$0xff]  ;;  %v60_v23 = vld [vmem:[#allocation2 + $0xc0] sm:$0xff] }
  0x1a   :  { %v61_v24 = vld [vmem:[#allocation2 + $0xc8] sm:$0xff]  ;;  %v313_v25 = vld.sshfl [vmem:[%s654_s0] sm:$0x33 pattern:$0x76325410]  ;;  %v399_v28 = vpack.c.bf16 %v43_v22, %v42_v21  ;;  %v62_v33 = vld [vmem:[#allocation2 + $0xd0] sm:$0xff] }
  0x1b   :  { %v84_v26 = vcombine.high %v313_v25, %v313_v25  ;;  %v314_v27 = vld.sshfl [vmem:[%s655_s1] sm:$0x33 pattern:$0x76325410]  ;;  %v401_v30 = vpack.c.bf16 %v61_v24, %v60_v23  ;;  %v45_v32 = vld [vmem:[#allocation2 + $0x48] sm:$0xff]  ;;  %v63_v34 = vld [vmem:[#allocation2 + $0xd8] sm:$0xff] }
  0x1c   :  { %392 = vmatpush3.bf16.msra.mxu0 %v391_v13  ;;  %424 = vmatpush3.bf16.msra.mxu1 %v391_v13  ;;  %v175_v29 = vcombine.high %v314_v27, %v314_v27  ;;  %v44_v31 = vld [vmem:[#allocation2 + $0x40] sm:$0xff]  ;;  %v405_v36 = vpack.c.bf16 %v63_v34, %v62_v33  ;;  %v46_v37 = vld [vmem:[#allocation2 + $0x50] sm:$0xff]  ;;  %v47_v38 = vld [vmem:[#allocation2 + $0x58] sm:$0xff] }
  0x1d   :  { %394 = vmatprep.subr.bf16.mxu0 %v393_v14  ;;  %426 = vmatprep.subr.bf16.mxu1 %v393_v14  ;;  %v403_v35 = vpack.c.bf16 %v45_v32, %v44_v31  ;;  %v64_v39 = vld [vmem:[#allocation2 + $0xe0] sm:$0xff]  ;;  %v65_v40 = vld [vmem:[#allocation2 + $0xe8] sm:$0xff]  ;;  %v407_v41 = vpack.c.bf16 %v47_v38, %v46_v37  ;;  %v66_v45 = vld [vmem:[#allocation2 + $0xf0] sm:$0xff] }
  0x1e   :  { %151 = vmatprep.mubr.f32.mxu0 %v84_v26  ;;  %242 = vmatprep.mubr.f32.mxu1 %v175_v29  ;;  %v409_v42 = vpack.c.bf16 %v65_v40, %v64_v39  ;;  %v48_v43 = vld [vmem:[#allocation2 + $0x60] sm:$0xff]  ;;  %v49_v44 = vld [vmem:[#allocation2 + $0x68] sm:$0xff]  ;;  %v67_v46 = vld [vmem:[#allocation2 + $0xf8] sm:$0xff] }
  0x1f   :  { %v411_v47 = vpack.c.bf16 %v49_v44, %v48_v43  ;;  %v413_v48 = vpack.c.bf16 %v67_v46, %v66_v45  ;;  %v50_v49 = vld [vmem:[#allocation2 + $0x70] sm:$0xff]  ;;  %v51_v50 = vld [vmem:[#allocation2 + $0x78] sm:$0xff]  ;;  %v312_v54 = vld [vmem:[%s657_s3] ss:$0 sm:$0xff]  ;;  %s556_s3 = smov [#allocation6]  }
  0x20   :  { %396 = vmatpush3.bf16.msra.mxu0 %v395_v19  ;;  %428 = vmatpush3.bf16.msra.mxu1 %v395_v19  ;;  %v415_v51 = vpack.c.bf16 %v51_v50, %v50_v49  ;;  %s286_s14 = sshll.u32 %s556_s3, 4  ;;  %s287_s14 = int_to_ptr.vmem [resolvable:$true] %s286_s14 }
  0x21   :  { %398 = vmatprep.subr.bf16.mxu0 %v397_v20  ;;  %430 = vmatprep.subr.bf16.mxu1 %v397_v20  ;;  %s481_s15 = scalar_lea.vmem %s287_s14, 32  ;;  %p486_p9 = scmp.lt.s32.totalorder %s287_s14, %s287_s14 }
  0x22   :  { %p482_p8 = scmp.ne.s32.totalorder %s287_s14, %s481_s15  ;;  %p487_p10 = scmp.lt.s32.totalorder %s481_s15, %s481_s15 }
  0x24   :  { %400 = vmatpush3.bf16.msra.mxu0 %v399_v28  ;;  %432 = vmatpush3.bf16.msra.mxu1 %v399_v28  ;;  %p488_p11 = por %p487_p10, %p486_p9 }
  0x25   :  { %402 = vmatprep.subr.bf16.mxu0 %v401_v30  ;;  %434 = vmatprep.subr.bf16.mxu1 %v401_v30 }
  0x26   :  { %p489_p12 = pnand %p488_p11, %p482_p8 }
  0x28   :  { %404 = vmatpush3.bf16.msra.mxu0 %v403_v35  ;;  %436 = vmatpush3.bf16.msra.mxu1 %v403_v35 }
  0x29   :  { %406 = vmatprep.subr.bf16.mxu0 %v405_v36  ;;  %438 = vmatprep.subr.bf16.mxu1 %v405_v36 }
  0x2c   :  { %408 = vmatpush3.bf16.msra.mxu0 %v407_v41  ;;  %440 = vmatpush3.bf16.msra.mxu1 %v407_v41 }
  0x2d   :  { %410 = vmatprep.subr.bf16.mxu0 %v409_v42  ;;  %442 = vmatprep.subr.bf16.mxu1 %v409_v42 }
  0x30   :  { %412 = vmatpush3.bf16.msra.mxu0 %v411_v47  ;;  %444 = vmatpush3.bf16.msra.mxu1 %v411_v47 }
  0x31   :  { %414 = vmatprep.subr.bf16.mxu0 %v413_v48  ;;  %446 = vmatprep.subr.bf16.mxu1 %v413_v48 }
  0x34   :  { %416 = vmatpush3.bf16.msra.mxu0 %v415_v51  ;;  %448 = vmatpush3.bf16.msra.mxu1 %v415_v51 }
  0x37   :  { %152 = vmatmul.mubr.f32.vlgmr.msra.gmra.mrb[0].mxu0 %v313_v25  ;;  %243 = vmatmul.mubr.f32.vlgmr.msra.gmra.mrb[0].mxu1 %v314_v27 }
 0x10a   :  { %v347_v52 = vpop.f32.mrb[0].mxu0  ;;  %v382_v53 = vpop.f32.mrb[0].mxu1 }
 0x10b   :  { %v348_v55 = vpop.f32.mrb[1].mxu0  ;;  %v383_v56 = vpop.f32.mrb[1].mxu1 }
 0x10c   :  { %v349_v57 = vadd.f32 %v348_v55, %v347_v52  ;;  %v384_v58 = vadd.f32 %v383_v56, %v382_v53 }
 0x10e   :  { %v154_v59 = vadd.f32 %v349_v57, %v312_v54  ;;  %v245_v60 = vadd.f32 %v384_v58, %v312_v54 }
 0x110   :  { %v157_v61 = vmul.f32 %v154_v59, %v154_v59  ;;  %v248_v62 = vmul.f32 %v245_v60, %v245_v60 }
 0x112   :  { %v159_v63 = vsel %vm158_vm0, %v157_v61, 0.0  ;;  %v249_v0 = vsel %vm158_vm0, %v248_v62, 0.0 }
 0x113   :  { %160 = vadd.xlane.f32.xlu0 %v159_v63 }
 0x117   :  { %250 = vadd.xlane.f32.xlu0 %v249_v0 }
 0x1a0   :  { %v161_v1 = vpop.xlane.xlu0 %160 }
 0x1a1   :  { %v162_v2 = vmax.f32 %v161_v1, 1e-24 }
 0x1a3   :  { %455 = vrsqrt.f32 %v162_v2 }
 0x1a4   :  { %v251_v3 = vpop.xlane.xlu0 %250 }
 0x1a5   :  { %v252_v4 = vmax.f32 %v251_v3, 1e-24 }
 0x1a7   :  { %457 = vrsqrt.f32 %v252_v4 }
 0x1ad   :  { %v456_v5 = vpop.eup %455 }
 0x1ae   :  { %v164_v6 = vmul.f32 %v456_v5, %v154_v59 }
 0x1b0   :  { %165 = vst [vmem:[#allocation6] sm:$0x3] %v164_v6 }
 0x1b1   :  { %v458_v7 = vpop.eup %457 }
 0x1b2   :  { %v254_v8 = vmul.f32 %v458_v7, %v245_v60 }
 0x1b4   :  { %v256_v9 = vmul.f32 %v254_v8, %v164_v6  ;;  %255 = vst [vmem:[#allocation8] sm:$0x3] %v254_v8 }
 0x1b6   :  { %v257_v10 = vsel %vm158_vm0, %v256_v9, 0.0 }
 0x1b7   :  { %258 = vadd.xlane.f32.xlu1 %v257_v10 }
 0x1b8   :  { %492 = shalt.err (!%p489_p12)
}
 0x1b9   :  { %s493_s18 = scalar_lea.hbm %s659_s5, 32 }
 0x1ba   :  { %p494_p13 = scmp.ne.s32.totalorder %s659_s5, %s493_s18  ;;  %p497_p0 = scmp.lt.u32.totalorder %s493_s18, %s659_s5 }
 0x1bc   :  { %p499_p1 = pnand %p497_p0, %p494_p13 }
 0x1be   :  { %502 = shalt.err (!%p499_p1)
}
 0x1bf   :  { %289 = dma.vmem_to_hbm [thread:$0]  %s287_s14, 32, %s659_s5, [#allocation7]  }
 0x1c0   :  { %s557_s25 = smov [#allocation8]  }
 0x1c1   :  { %s296_s26 = sshll.u32 %s557_s25, 4  ;;  %s297_s26 = int_to_ptr.vmem [resolvable:$true] %s296_s26 }
 0x1c2   :  { %s503_s27 = scalar_lea.vmem %s297_s26, 32  ;;  %p508_p3 = scmp.lt.s32.totalorder %s297_s26, %s297_s26 }
 0x1c3   :  { %p504_p2 = scmp.ne.s32.totalorder %s297_s26, %s503_s27  ;;  %p509_p4 = scmp.lt.s32.totalorder %s503_s27, %s503_s27 }
 0x1c5   :  { %p510_p5 = por %p509_p4, %p508_p3 }
 0x1c7   :  { %p511_p6 = pnand %p510_p5, %p504_p2 }
 0x1c9   :  { %514 = shalt.err (!%p511_p6)
}
 0x1ca   :  { %s515_s30 = scalar_lea.hbm %s660_s6, 32 }
 0x1cb   :  { %p516_p7 = scmp.ne.s32.totalorder %s660_s6, %s515_s30  ;;  %p519_p8 = scmp.lt.u32.totalorder %s515_s30, %s660_s6 }
 0x1cd   :  { %p521_p9 = pnand %p519_p8, %p516_p7 }
 0x1cf   :  { %524 = shalt.err (!%p521_p9)
}
 0x1d0   :  { %299 = dma.vmem_to_hbm [thread:$0]  %s297_s26, 32, %s660_s6, [#allocation7]   ;;  %v261_v11 = vlaneseq  ;;  %vm268_vm1 = vcmask 8192  }
 0x1d1   :  { %s558_s11 = smov [#allocation5]  }
 0x1d2   :  { %v262_v12 = vand.u32 127, %v261_v11  ;;  %v264_v13 = vshrl.u32 %v261_v11, 7  ;;  %s276_s12 = sshll.u32 %s558_s11, 4  ;;  %s277_s12 = int_to_ptr.vmem [resolvable:$true] %s276_s12 }
 0x1d3   :  { %s525_s13 = scalar_lea.vmem %s277_s12, 16  ;;  %s529_s0 = scalar_lea.vmem %s277_s12, 32 }
 0x1d4   :  { %v265_v14 = vsub.s32 %v262_v12, %v264_v13  ;;  %p526_p10 = scmp.ne.s32.totalorder %s277_s12, %s525_s13  ;;  %p530_p11 = scmp.lt.s32.totalorder %s277_s12, %s277_s12 }
 0x1d5   :  { %p531_p12 = scmp.lt.s32.totalorder %s529_s0, %s525_s13 }
 0x1d7   :  { %p532_p13 = por %p531_p12, %p530_p11 }
 0x1d9   :  { %p533_p0 = pnand %p532_p13, %p526_p10 }
 0x244   :  { %v259_v15 = vpop.xlane.xlu1 %258 }
 0x245   :  { %v266_v16 = vrot.slane %v259_v15, %v265_v14 }
 0x247   :  { %269 = vst.msk [vmem:[#allocation5] sm:$0x1] %vm268_vm1, %v266_v16 }
 0x248   :  { %536 = shalt.err (!%p533_p0)
}
 0x249   :  { %s537_s3 = scalar_lea.hbm %s658_s4, 16 }
 0x24a   :  { %p538_p1 = scmp.ne.s32.totalorder %s658_s4, %s537_s3  ;;  %p541_p2 = scmp.lt.u32.totalorder %s537_s3, %s658_s4 }
 0x24c   :  { %p543_p3 = pnand %p541_p2, %p538_p1 }
 0x24e   :  { %546 = shalt.err (!%p543_p3)
}
 0x24f   :  { %279 = dma.vmem_to_hbm [thread:$0]  %s277_s12, 16, %s658_s4, [#allocation4]  }
 0x250   :  { %549 = dma.done.wait [#allocation4], 16  }
 0x251   :  { %550 = vsyncadd [#allocation4], 4294967280 }
 0x252   :  { %551 = dma.done.wait [#allocation7], 64  }
 0x253   :  { %552 = vsyncadd [#allocation7], 4294967232 }
 0x254   :  { %309 = vsyncpa [#allocation3], 1 }
 0x255   :  { %310 = vsyncpa [#allocation4], 1 }
 0x256   :  { %311 = vsyncpa [#allocation7], 1 }

</bundles_post_ra>
